<compile_context>
chip_gen: v6e
topology: v6e:2x2x1
jax: 0.10.0
libtpu: 0.0.40
codegen_flags: <defaults>
</compile_context>

<pallas_src>
import functools

import jax
import jax.numpy as jnp
from jax.experimental import pallas as pl
from jax.experimental.pallas import tpu as pltpu

_LANE = 128
_SUBLANE = 8


def _round_up(x, m):
    return (x + m - 1) // m * m


# ----------------------------------------------------------------------------
# Kernel
# ----------------------------------------------------------------------------
def _fused_mlp_kernel(*refs, n_hidden, has_head):
    # refs = (x, w_0, shift_0, ..., w_{H-1}, shift_{H-1}, [head_w, head_b], out)
    #   x:       (tm, D0)           f32  VMEM (real feature width, no lane pad)
    #   w_l:     (Din_l, Dout_lp)   bf16 VMEM (BN scale folded, padded cols/rows = 0)
    #   shift_l: (1,  Dout_lp)      f32  VMEM (folded bias/BN shift, padding = 0)
    #   head_w:  (1,  D_lastp)      bf16 VMEM (row vector of the 1-wide head)
    #   head_b:  (1, 1)             f32  VMEM
    #   out:     (tm, 1) or (tm, D_lastp)
    x_ref = refs[0]
    o_ref = refs[-1]

    h = x_ref[...]                       # activations stay in VMEM/vregs throughout
    idx = 1
    for _ in range(n_hidden):
        w_ref, s_ref = refs[idx], refs[idx + 1]
        idx += 2
        # bf16 x bf16 MXU matmul, f32 accumulation; epilogue = shift + ReLU.
        z = jnp.dot(h.astype(jnp.bfloat16), w_ref[...],
                    preferred_element_type=jnp.float32)
        h = jnp.maximum(z + s_ref[...], 0.0)
    if has_head:
        # 1-wide output head: elementwise multiply (VPU) + lane reduction (XLU)
        # instead of a 128-lane zero-padded MXU matmul.
        w_ref, b_ref = refs[idx], refs[idx + 1]
        h = jnp.sum(h * w_ref[...].astype(jnp.float32), axis=-1, keepdims=True)
        h = h + b_ref[...]
    o_ref[...] = h.astype(o_ref.dtype)


# ----------------------------------------------------------------------------
# One-time parameter preparation (hoisted out of the per-call path)
# ----------------------------------------------------------------------------
def prepare_fused_params(hidden_params, out_params, eps=1e-5,
                         weight_dtype=jnp.bfloat16):
    """Fold eval-mode BatchNorm into the Linear layers, zero-pad internal dims to
    128 lanes and cast weights to bf16.  Call ONCE and reuse across forward calls.

      y = ((x @ W.T + b) - mean) * gamma / sqrt(var+eps) + beta
        =  x @ (W.T * s) + (b*s + beta - mean*s),   s = gamma / sqrt(var+eps)
    """
    hidden_w, hidden_s = [], []
    for li, p in enumerate(hidden_params):
        d_out, d_in = p["w"].shape
        scale = p["gamma"] / jnp.sqrt(p["var"] + eps)                  # (d_out,)
        w = (p["w"].T * scale[None, :]).astype(jnp.float32)            # (d_in, d_out)
        shift = p["b"] * scale + p["beta"] - p["mean"] * scale         # (d_out,)
        # First layer's input dim stays at its real size (matches unpadded x);
        # all other dims are kernel-internal, pad them to 128 lanes. Zero padding
        # is exact: padded cols of z are 0 and stay 0 through ReLU.
        din_p = d_in if li == 0 else _round_up(d_in, _LANE)
        dout_p = _round_up(d_out, _LANE)
        w_p = jnp.zeros((din_p, dout_p), jnp.float32).at[:d_in, :d_out].set(w)
        s_p = jnp.zeros((1, dout_p), jnp.float32).at[0, :d_out].set(shift)
        hidden_w.append(w_p.astype(weight_dtype))
        hidden_s.append(s_p)

    head_w = head_b = None
    if out_params is not None:
        d_out, d_in = out_params["w"].shape
        assert d_out == 1
        din_p = _round_up(d_in, _LANE) if hidden_params else d_in
        w_p = jnp.zeros((1, din_p), jnp.float32).at[0, :d_in].set(out_params["w"][0])
        head_w = w_p.astype(weight_dtype)
        head_b = out_params["b"].reshape(1, 1).astype(jnp.float32)
        out_dim = 1
    else:
        out_dim = hidden_params[-1]["w"].shape[0]

    return dict(hidden_w=hidden_w, hidden_s=hidden_s,
                head_w=head_w, head_b=head_b, out_dim=out_dim)


# ----------------------------------------------------------------------------
# Forward
# ----------------------------------------------------------------------------
def fused_mlp(x, params, *, block_b=1024):
    """Run the whole MLP in one Pallas kernel.  `params` from prepare_fused_params."""
    B, D0 = x.shape
    hidden_w, hidden_s = params["hidden_w"], params["hidden_s"]
    head_w, head_b = params["head_w"], params["head_b"]
    n_hidden = len(hidden_w)
    has_head = head_w is not None

    # --- batch tiling --------------------------------------------------------
    B8 = _round_up(B, _SUBLANE)
    tm = min(block_b, B8)
    # Prefer >= 2 batch tiles so the 'parallel' axis can shard across v7x's
    # two TensorCores (no effect on v5e/v6e which have a single TC).
    if B8 // tm < 2 and tm >= 2 * _SUBLANE:
        tm = _round_up((B8 + 1) // 2, _SUBLANE)
    B_p = _round_up(B8, tm)
    x_in = x
    if B_p != B:
        # Row-only padding for ragged batches; the feature (lane) dim is never padded.
        x_in = jnp.zeros((B_p, D0), x.dtype).at[:B].set(x)

    out_w = 1 if has_head else hidden_w[-1].shape[1]

    # --- specs ---------------------------------------------------------------
    in_specs = [pl.BlockSpec((tm, D0), lambda i: (i, 0))]
    operands = [x_in]
    for w, s in zip(hidden_w, hidden_s):
        in_specs.append(pl.BlockSpec(w.shape, lambda i: (0, 0)))   # resident weights
        in_specs.append(pl.BlockSpec(s.shape, lambda i: (0, 0)))
        operands.extend([w, s])
    if has_head:
        in_specs.append(pl.BlockSpec(head_w.shape, lambda i: (0, 0)))
        in_specs.append(pl.BlockSpec(head_b.shape, lambda i: (0, 0)))
        operands.extend([head_w, head_b])
    out_spec = pl.BlockSpec((tm, out_w), lambda i: (i, 0))

    # --- VMEM budget (explicit: v5e default scoped limit is only 16 MiB) -----
    def _nbytes(a):
        return a.size * a.dtype.itemsize
    weight_bytes = 2 * sum(_nbytes(a) for a in operands[1:])       # double-buffered
    io_bytes = 2 * (tm * D0 * 4 + tm * out_w * 4)                  # double-buffered tiles
    max_width = max([w.shape[1] for w in hidden_w] + [D0, out_w])
    act_bytes = 4 * tm * max_width * 4                             # f32 working set slack
    vmem_limit = int(min(64 << 20,
                         max(32 << 20,
                             weight_bytes + io_bytes + act_bytes + (4 << 20))))

    kernel = functools.partial(_fused_mlp_kernel,
                               n_hidden=n_hidden, has_head=has_head)

    out_p = pl.pallas_call(
        kernel,
        out_shape=jax.ShapeDtypeStruct((B_p, out_w), jnp.float32),
        grid_spec=pltpu.PrefetchScalarGridSpec(
            num_scalar_prefetch=0,
            grid=(B_p // tm,),
            in_specs=in_specs,
            out_specs=out_spec,
        ),
        compiler_params=pltpu.CompilerParams(
            dimension_semantics=("parallel",),
            vmem_limit_bytes=vmem_limit,
        ),
    )(*operands)

    out = out_p if B_p == B else out_p[:B]
    if params["out_dim"] != out_w:
        out = out[:, :params["out_dim"]]
    return out


# ----------------------------------------------------------------------------
# Synthetic parameters + pure-JAX reference
# ----------------------------------------------------------------------------
def init_mlp_params(key, input_dim, embed_dims, output_layer=True):
    """Deterministic synthetic parameters matching the PyTorch module's shapes."""
    params = []
    d_in = input_dim
    for d_out in embed_dims:
        key, k_w, k_b, k_g, k_be, k_m, k_v = jax.random.split(key, 7)
        w = jax.random.normal(k_w, (d_out, d_in), jnp.float32) * 0.1    # Linear.weight
        b = jax.random.normal(k_b, (d_out,), jnp.float32) * 0.1         # Linear.bias
        gamma = 1.0 + 0.1 * jax.random.normal(k_g, (d_out,), jnp.float32)  # BN.weight
        beta = 0.1 * jax.random.normal(k_be, (d_out,), jnp.float32)        # BN.bias
        running_mean = 0.1 * jax.random.normal(k_m, (d_out,), jnp.float32)
        running_var = 1.0 + 0.1 * jax.random.uniform(k_v, (d_out,), jnp.float32)
        params.append(dict(w=w, b=b, gamma=gamma, beta=beta,
                           mean=running_mean, var=running_var))
        d_in = d_out
    out_params = None
    if output_layer:
        key, k_w, k_b = jax.random.split(key, 3)
        w = jax.random.normal(k_w, (1, d_in), jnp.float32) * 0.1
        b = jax.random.normal(k_b, (1,), jnp.float32) * 0.1
        out_params = dict(w=w, b=b)
    return params, out_params


def mlp_forward_ref(x, hidden_params, out_params, eps=1e-5):
    h = x
    for p in hidden_params:
        z = h @ p["w"].T + p["b"]
        z = (z - p["mean"]) / jnp.sqrt(p["var"] + eps) * p["gamma"] + p["beta"]
        h = jnp.maximum(z, 0.0)
    if out_params is not None:
        h = h @ out_params["w"].T + out_params["b"]
    return h


if __name__ == "__main__":
    batch = 16
    input_dim = 32
    embed_dims = (64, 32)

    key = jax.random.PRNGKey(0)
    key, kx = jax.random.split(key)
    x = jax.random.normal(kx, (batch, input_dim), jnp.float32)

    hidden_params, out_params = init_mlp_params(key, input_dim, embed_dims,
                                                output_layer=True)

    # One-time preparation (BN fold, padding, bf16 cast) — reused across calls.
    prepared = prepare_fused_params(hidden_params, out_params)
    prepared = jax.block_until_ready(prepared)

    out = fused_mlp(x, prepared)
    out = jax.block_until_ready(out)

    ref = mlp_forward_ref(x, hidden_params, out_params)
    assert out.shape == (batch, 1), out.shape
    # bf16 weights / bf16 matmul operands (f32 accumulation) -> slightly looser
    # tolerance than the pure-f32 version.
    assert jnp.allclose(out, ref, atol=2e-2, rtol=2e-2), (
        float(jnp.max(jnp.abs(out - ref))))

    print("KERNEL_OK")
</pallas_src>

<mosaic_0001>
module attributes {stable_mosaic.version = 11 : i64} {
  func.func @_fused_mlp_kernel(%arg0: i32, %arg1: memref<8x32xf32, #tpu.memory_space<vmem>>, %arg2: memref<32x128xbf16, #tpu.memory_space<vmem>>, %arg3: memref<1x128xf32, #tpu.memory_space<vmem>>, %arg4: memref<128x128xbf16, #tpu.memory_space<vmem>>, %arg5: memref<1x128xf32, #tpu.memory_space<vmem>>, %arg6: memref<1x128xbf16, #tpu.memory_space<vmem>>, %arg7: memref<1x1xf32, #tpu.memory_space<vmem>>, %arg8: memref<8x1xf32, #tpu.memory_space<vmem>>) attributes {dimension_semantics = [#tpu.dimension_semantics<parallel>], iteration_bounds = array<i64: 2>, scalar_prefetch = 0 : i64, scratch_operands = 0 : i64, tpu.core_type = #tpu.core_type<tc>, window_params = [{transform_indices = @transform_0, window_bounds = array<i64: 8, 32>}, {pipeline_mode = #tpu.pipeline_mode<synchronous>, transform_indices = @transform_1, window_bounds = array<i64: 32, 128>}, {pipeline_mode = #tpu.pipeline_mode<synchronous>, transform_indices = @transform_2, window_bounds = array<i64: 1, 128>}, {pipeline_mode = #tpu.pipeline_mode<synchronous>, transform_indices = @transform_3, window_bounds = array<i64: 128, 128>}, {pipeline_mode = #tpu.pipeline_mode<synchronous>, transform_indices = @transform_4, window_bounds = array<i64: 1, 128>}, {pipeline_mode = #tpu.pipeline_mode<synchronous>, transform_indices = @transform_5, window_bounds = array<i64: 1, 128>}, {pipeline_mode = #tpu.pipeline_mode<synchronous>, transform_indices = @transform_6, window_bounds = array<i64: 1, 1>}, {transform_indices = @transform_7, window_bounds = array<i64: 8, 1>}]} {
    %c0 = arith.constant 0 : index
    %c0_0 = arith.constant 0 : index
    %0 = vector.load %arg1[%c0, %c0_0] : memref<8x32xf32, #tpu.memory_space<vmem>>, vector<8x32xf32>
    %1 = arith.truncf %0 : vector<8x32xf32> to vector<8x32xbf16>
    %c0_1 = arith.constant 0 : index
    %c0_2 = arith.constant 0 : index
    %2 = vector.load %arg2[%c0_1, %c0_2] : memref<32x128xbf16, #tpu.memory_space<vmem>>, vector<32x128xbf16>
    %cst = arith.constant dense<0.000000e+00> : vector<8x128xf32>
    %3 = tpu.matmul %1, %2, %cst {dimension_numbers = #tpu.dot_dimension_numbers<[1], [0], [0], [1], [0, 0, 1, 1], [], []>} : vector<8x32xbf16>, vector<32x128xbf16>, vector<8x128xf32> -> vector<8x128xf32>
    %c0_3 = arith.constant 0 : index
    %c0_4 = arith.constant 0 : index
    %4 = vector.load %arg3[%c0_3, %c0_4] : memref<1x128xf32, #tpu.memory_space<vmem>>, vector<1x128xf32>
    %5 = vector.broadcast %4 : vector<1x128xf32> to vector<8x128xf32>
    %6 = arith.addf %3, %5 : vector<8x128xf32>
    %cst_5 = arith.constant 0.000000e+00 : f32
    %7 = vector.broadcast %cst_5 : f32 to vector<8x128xf32>
    %8 = arith.maximumf %6, %7 : vector<8x128xf32>
    %9 = arith.truncf %8 : vector<8x128xf32> to vector<8x128xbf16>
    %c0_6 = arith.constant 0 : index
    %c0_7 = arith.constant 0 : index
    %10 = vector.load %arg4[%c0_6, %c0_7] : memref<128x128xbf16, #tpu.memory_space<vmem>>, vector<128x128xbf16>
    %cst_8 = arith.constant dense<0.000000e+00> : vector<8x128xf32>
    %11 = tpu.matmul %9, %10, %cst_8 {dimension_numbers = #tpu.dot_dimension_numbers<[1], [0], [0], [1], [0, 0, 1, 1], [], []>} : vector<8x128xbf16>, vector<128x128xbf16>, vector<8x128xf32> -> vector<8x128xf32>
    %c0_9 = arith.constant 0 : index
    %c0_10 = arith.constant 0 : index
    %12 = vector.load %arg5[%c0_9, %c0_10] : memref<1x128xf32, #tpu.memory_space<vmem>>, vector<1x128xf32>
    %13 = vector.broadcast %12 : vector<1x128xf32> to vector<8x128xf32>
    %14 = arith.addf %11, %13 : vector<8x128xf32>
    %cst_11 = arith.constant 0.000000e+00 : f32
    %15 = vector.broadcast %cst_11 : f32 to vector<8x128xf32>
    %16 = arith.maximumf %14, %15 : vector<8x128xf32>
    %c0_12 = arith.constant 0 : index
    %c0_13 = arith.constant 0 : index
    %17 = vector.load %arg6[%c0_12, %c0_13] : memref<1x128xbf16, #tpu.memory_space<vmem>>, vector<1x128xbf16>
    %18 = arith.extf %17 : vector<1x128xbf16> to vector<1x128xf32>
    %19 = vector.broadcast %18 : vector<1x128xf32> to vector<8x128xf32>
    %20 = arith.mulf %16, %19 : vector<8x128xf32>
    %cst_14 = arith.constant dense<0.000000e+00> : vector<8xf32>
    %21 = vector.multi_reduction <add>, %20, %cst_14 [1] : vector<8x128xf32> to vector<8xf32>
    %22 = vector.shape_cast %21 : vector<8xf32> to vector<8x1xf32>
    %c0_15 = arith.constant 0 : index
    %c0_16 = arith.constant 0 : index
    %23 = vector.load %arg7[%c0_15, %c0_16] : memref<1x1xf32, #tpu.memory_space<vmem>>, vector<1x1xf32>
    %24 = vector.broadcast %23 : vector<1x1xf32> to vector<8x1xf32>
    %25 = arith.addf %22, %24 : vector<8x1xf32>
    %c0_17 = arith.constant 0 : index
    %c0_18 = arith.constant 0 : index
    %26 = vector.load %arg8[%c0_17, %c0_18] : memref<8x1xf32, #tpu.memory_space<vmem>>, vector<8x1xf32>
    tpu.vector_store %arg8[%c0_17, %c0_18], %25 {strides = array<i32>} : memref<8x1xf32, #tpu.memory_space<vmem>>, vector<8x1xf32>,
    return
  }
  func.func @transform_0(%arg0: i32) -> (i32, i32) {
    %c0_i32 = arith.constant 0 : i32
    %c0_i32_0 = arith.constant 0 : i32
    return %arg0, %c0_i32 : i32, i32
  }
  func.func @transform_1(%arg0: i32) -> (i32, i32) {
    %c0_i32 = arith.constant 0 : i32
    %c0_i32_0 = arith.constant 0 : i32
    %c0_i32_1 = arith.constant 0 : i32
    return %c0_i32, %c0_i32_0 : i32, i32
  }
  func.func @transform_2(%arg0: i32) -> (i32, i32) {
    %c0_i32 = arith.constant 0 : i32
    %c0_i32_0 = arith.constant 0 : i32
    %c0_i32_1 = arith.constant 0 : i32
    return %c0_i32, %c0_i32_0 : i32, i32
  }
  func.func @transform_3(%arg0: i32) -> (i32, i32) {
    %c0_i32 = arith.constant 0 : i32
    %c0_i32_0 = arith.constant 0 : i32
    %c0_i32_1 = arith.constant 0 : i32
    return %c0_i32, %c0_i32_0 : i32, i32
  }
  func.func @transform_4(%arg0: i32) -> (i32, i32) {
    %c0_i32 = arith.constant 0 : i32
    %c0_i32_0 = arith.constant 0 : i32
    %c0_i32_1 = arith.constant 0 : i32
    return %c0_i32, %c0_i32_0 : i32, i32
  }
  func.func @transform_5(%arg0: i32) -> (i32, i32) {
    %c0_i32 = arith.constant 0 : i32
    %c0_i32_0 = arith.constant 0 : i32
    %c0_i32_1 = arith.constant 0 : i32
    return %c0_i32, %c0_i32_0 : i32, i32
  }
  func.func @transform_6(%arg0: i32) -> (i32, i32) {
    %c0_i32 = arith.constant 0 : i32
    %c0_i32_0 = arith.constant 0 : i32
    %c0_i32_1 = arith.constant 0 : i32
    return %c0_i32, %c0_i32_0 : i32, i32
  }
  func.func @transform_7(%arg0: i32) -> (i32, i32) {
    %c0_i32 = arith.constant 0 : i32
    %c0_i32_0 = arith.constant 0 : i32
    return %arg0, %c0_i32 : i32, i32
  }
}

</mosaic_0001>

<bundles_post_ra>
// kernel: tpu_custom_call.1
= control target key start
LH: loop header
LB: loop body
LE: loop exit
PB: predicated region body
PF: predicated region fallthrough
CT: control target
= control target key end

     0   :  { %s1061_s0 = inlined_call_operand.hbm [shape: f32[16,32], index: 0, kind: input, shape index: {}]   ;;  %s1062_s1 = inlined_call_operand.hbm [shape: bf16[32,128], index: 1, kind: input, shape index: {}]   ;;  %s1063_s2 = inlined_call_operand.vmem [shape: f32[1,128], index: 2, kind: input, shape index: {}]   ;;  %s1064_s3 = inlined_call_operand.hbm [shape: bf16[128,128], index: 3, kind: input, shape index: {}]   ;;  %s1065_s4 = inlined_call_operand.vmem [shape: f32[1,128], index: 4, kind: input, shape index: {}]   ;;  %s1066_s5 = inlined_call_operand.vmem [shape: bf16[1,128], index: 5, kind: input, shape index: {}]   ;;  %s1067_s6 = inlined_call_operand.<no memory space> [shape: f32[1,1], index: 6, kind: input, shape index: {}]   ;;  %s1068_s7 = inlined_call_operand.vmem [shape: f32[16,1], index: 7, kind: output, shape index: {}]  }
   0x1   :  { %v12_v0 = vstv %s1067_s6 }
   0x2   :  { %13 = vst [vmem:[#allocation2] sm:$0x1] %v12_v0 }
   0x3   :  { %14 = vsyncpa [#allocation4], 0 }
   0x4   :  { %16 = vsyncpa [#allocation4 + $0x1], 0 }
   0x5   :  { %17 = vsyncpa [#allocation6], 0  ;;  %s924_s26 = smov 0   ;;  %s926_s27 = smov 0  }
   0x6   :  { %s928_s28 = smov 0   ;;  %s930_s29 = smov 0  }
   0x7 LB: > { %s943_s6 = sadd.s32 4294967295, %s872_s29   ;;  %p43_p0 = scmp.ne.s32.totalorder %s864_s27, %s860_s26  ;;  %s872_s29 = sphi %s930_s29, %s1084_s29   ;;  %s868_s28 = sphi %s928_s28, %s1083_s28   ;;  %s864_s27 = sphi %s926_s27, %s1082_s27   ;;  %s860_s26 = sphi %s924_s26, %s1081_s26  }
   0x8   : > { %p1069_p1 = scmp.eq.s32.totalorder %s943_s6, 0  ;;  %p613_p2 = scmp.ge.s32.totalorder %s872_s29, 1 }
   0x9   : > { %p206_p3 = scmp.lt.s32.totalorder %s872_s29, 3  ;;  %s874_s9 = smov [#allocation5]  }
   0xa   : > { %p951_p4 = por %p1069_p1, %p43_p0  ;;  %s218_s10 = sshll.u32 %s874_s9, 4  ;;  %s219_s10 = int_to_ptr.vmem [resolvable:$true] %s218_s10 }
   0xb   : > { %p955_p5 = pnand %p613_p2, %p206_p3  ;;  %s875_s12 = smov [#allocation7]  }
   0xc   : > { %s1072_s30 = scalar_select %p951_p4, 1, 0 }
   0xd   : > { %s1073_s8 = scalar_select %p955_p5, 1, 0 }
   0xe   : > { %p690_p6 = pneg %p955_p5  ;;  %s234_s13 = sshll.u32 %s875_s12, 4  ;;  %s235_s13 = int_to_ptr.vmem [resolvable:$true] %s234_s13 }
   0xf   : > { %s765_s14 = scalar_lea.vmem %s219_s10, 256  ;;  %p773_p12 = scmp.lt.s32.totalorder %s219_s10, %s219_s10 }
  0x10   : > { %p963_p7 = pnand %p690_p6, %p1069_p1  ;;  %p766_p9 = scmp.ne.s32.totalorder %s219_s10, %s765_s14 }
  0x11   : > { %p774_p13 = scmp.lt.s32.totalorder %s765_s14, %s765_s14 }
  0x12   : > { %p756_p8 = pneg %p963_p7 }
  0x13   : > { %p775_p0 = por %p774_p13, %p773_p12 }
  0x14   : > { %p768_p10 = pnand %p766_p9, %p756_p8 }
  0x16   : > { %p769_p11 = pneg %p768_p10 }
  0x18   : > { %p776_p2 = pnand %p775_p0, %p769_p11 }
  0x1a   : > { %779 = shalt.err (!%p776_p2)
}
  0x1b   : > { %s876_s15 = smov 64   ;;  %s877_s16 = smov 4  }
  0x1c   : > { %693 = dma.hbm_to_vmem [thread:$0]  (!%p963_p7), %s1062_s1, 256, %s219_s10, [#allocation6], %s876_s15, %s876_s15, %s877_s16  }
  0x1d   : > { %s791_s19 = scalar_lea.vmem %s235_s13, 1024  ;;  %p799_p10 = scmp.lt.s32.totalorder %s235_s13, %s235_s13 }
  0x1e   : > { %p792_p3 = scmp.ne.s32.totalorder %s235_s13, %s791_s19  ;;  %p800_p1 = scmp.lt.s32.totalorder %s791_s19, %s791_s19 }
  0x20   : > { %p794_p6 = pnand %p792_p3, %p756_p8  ;;  %p801_p12 = por %p800_p1, %p799_p10 }
  0x22   : > { %p795_p9 = pneg %p794_p6 }
  0x24   : > { %p802_p11 = pnand %p801_p12, %p795_p9 }
  0x26   : > { %805 = shalt.err (!%p802_p11)
}
  0x27   : > { %696 = dma.hbm_to_vmem [thread:$0]  (!%p963_p7), %s1064_s3, 1024, %s235_s13, [#allocation6], %s876_s15, %s876_s15, %s877_s16  }
  0x28   : > { %s986_s22 = sadd.s32 1, %s872_s29   ;;  %s30_s23 = sadd.s32 1, %s868_s28 }
  0x29   : > { %s27_s24 = ssub.s32 %s872_s29, %s986_s22  ;;  %p37_p1 = scmp.ne.s32.totalorder %s868_s28, %s864_s27 }
  0x2a   : > { %p28_p8 = scmp.eq.s32.totalorder %s27_s24, 0  ;;  %p38_p13 = scmp.eq.s32.totalorder %s872_s29, 0 }
  0x2b   : > { %p703_p0 = scmp.lt.s32.totalorder %s872_s29, 2  ;;  %s257_s25 = sand.u32 1, %s868_s28  }
  0x2c   : > { %s997_s26 = scalar_select %p28_p8, %s868_s28, %s30_s23  }
  0x2d   : > { %p39_p2 = por %p38_p13, %p37_p1  ;;  %s617_s9 = sshll.u32 %s257_s25, 3 }
  0x2e   : > { %s618_s10 = sshll.u32 %s872_s29, 7  ;;  %s261_s13 = scalar_lea.vmem [#allocation3], %s617_s9 }
  0x2f   : > { %s1003_s14 = scalar_lea.hbm %s1061_s0, %s618_s10  ;;  %s268_s15 = sshll.u32 %s261_s13, 4  ;;  %s269_s15 = int_to_ptr.vmem [resolvable:$true] %s268_s15 }
  0x30   : > { %p1005_p7 = pnand %p703_p0, %p39_p2  ;;  %s258_s17 = scalar_lea.sflag [#allocation4], %s257_s25 }
  0x31   : > { %s806_s18 = scalar_lea.hbm %s1003_s14, 128  ;;  %s811_s20 = scalar_lea.hbm %s1061_s0, 256 }
  0x32   : > { %p807_p3 = scmp.ne.s32.totalorder %s1003_s14, %s806_s18  ;;  %p808_p6 = pneg %p1005_p7 }
  0x33   : > { %p812_p12 = scmp.lt.s32.totalorder %s1003_s14, %s1061_s0  ;;  %p813_p11 = scmp.lt.s32.totalorder %s811_s20, %s806_s18 }
  0x34   : > { %p809_p9 = pnand %p808_p6, %p807_p3 }
  0x35   : > { %p814_p1 = por %p813_p11, %p812_p12 }
  0x36   : > { %p810_p10 = pneg %p809_p9 }
  0x38   : > { %p815_p8 = pnand %p814_p1, %p810_p10 }
  0x3a   : > { %818 = shalt.err (!%p815_p8)
}
  0x3b   : > { %s819_s24 = scalar_lea.vmem %s269_s15, 128  ;;  %s878_s25 = smov [#allocation3]  }
  0x3c   : > { %p820_p13 = scmp.ne.s32.totalorder %s269_s15, %s819_s24  ;;  %s824_s9 = sshll.u32 %s878_s25, 4  ;;  %s825_s9 = int_to_ptr.vmem [resolvable:$false] %s824_s9 }
  0x3d   : > { %s826_s10 = scalar_lea.vmem %s825_s9, 256  ;;  %p827_p3 = scmp.lt.s32.totalorder %s269_s15, %s825_s9 }
  0x3e   : > { %p822_p0 = pnand %p820_p13, %p808_p6  ;;  %p828_p9 = scmp.lt.s32.totalorder %s826_s10, %s819_s24 }
  0x40   : > { %p823_p2 = pneg %p822_p0  ;;  %p829_p4 = por %p828_p9, %p827_p3 }
  0x42   : > { %p830_p5 = pnand %p829_p4, %p823_p2 }
  0x44   : > { %833 = shalt.err (!%p830_p5)
}
  0x45   : > { %700 = dma.hbm_to_vmem [thread:$0]  (!%p1005_p7), %s1003_s14, 128, %s269_s15, %s258_s17  }
  0x46   : > { %p1076_p10 = scmp.ne.s32.totalorder %s1073_s8, 0 }
  0x47   : > { %s279_s11 = sand.u32 (!%p1076_p10), 1, %s864_s27   ;;  %p1077_p6 = scmp.ne.s32.totalorder (!%p1076_p10), %s1072_s30, 0 }
  0x48   : > { %277 = sbr.rel (%p1076_p10) target bundleno = 630 (0x276), region = 48  ;;  %s620_s12 = sshll.u32 (!%p1076_p10), %s279_s11, 3 }
  0x49   : > { %s280_s13 = scalar_lea.sflag (!%p1076_p10), [#allocation4], %s279_s11  ;;  %s283_s18 = scalar_lea.vmem (!%p1076_p10), [#allocation3], %s620_s12 }
  0x4d   : > { %851 = dma.done.wait (%p1077_p6), %s280_s13, 128  }
  0x4e   : > { %853 = vsyncadd (%p1077_p6), %s280_s13, 4294967168  ;;  %p1078_p4 = scmp.eq.s32.totalorder %s943_s6, 0 }
  0x50   : > { %855 = dma.done.wait (%p1078_p4), [#allocation6], 1280   ;;  %p1079_p5 = pmov %p1078_p4 }
  0x51   : > { %v879_v1 = vmov 0.0   ;;  %vm880_vm0 = vmmov 0   ;;  %v744_v2 = vld [vmem:[#allocation5 + $0x8] sm:$0xff]   ;;  %v745_v3 = vld [vmem:[#allocation5] sm:$0xff]   ;;  %v326_v4 = vld [vmem:[%s283_s18] sm:$0xff]  ;;  %vm351_vm1 = vcmask 261120   ;;  %v511_v22 = vlaneseq }
  0x52   : > { %857 = vsyncadd (%p1079_p5), [#allocation6], 4294966016  ;;  %652 = vmatprep.subr.bf16.mxu0 %v879_v1  ;;  %656 = vmatprep.mubr.msk.bf16.mxu0 %vm880_vm0, %v879_v1  ;;  %v746_v5 = vld [vmem:[#allocation7 + $0x38] sm:$0xff]   ;;  %v327_v6 = vpack.c.bf16 %v326_v4, %v326_v4  ;;  %v747_v7 = vld [vmem:[#allocation7 + $0x30] sm:$0xff]   ;;  %p321_p7 = scmp.lt.s32.totalorder %s943_s6, 1  ;;  %vm526_vm2 = vcmask 7168  }
  0x53   : > { %660 = vmatprep.subr.bf16.mxu1 %v879_v1  ;;  %676 = vmatprep.mubr.msk.bf16.mxu1 %vm880_vm0, %v879_v1  ;;  %v748_v8 = vld [vmem:[#allocation7 + $0x28] sm:$0xff]   ;;  %v749_v9 = vld [vmem:[#allocation7 + $0x20] sm:$0xff]   ;;  %v750_v10 = vld [vmem:[#allocation7 + $0x18] sm:$0xff]   ;;  %v512_v23 = vshrl.u32 %v511_v22, 7 }
  0x54   : > { %653 = vmatpush3.bf16.msra.mxu0 %v744_v2  ;;  %661 = vmatpush3.bf16.msra.mxu1 %v746_v5  ;;  %v751_v11 = vld [vmem:[#allocation7 + $0x10] sm:$0xff]   ;;  %v752_v12 = vld [vmem:[#allocation7 + $0x8] sm:$0xff]   ;;  %v753_v13 = vld [vmem:[#allocation7] sm:$0xff]   ;;  %s1086_s6 = smov (!%p321_p7, %s943_s6), 1 }
  0x55   : > { %654 = vmatprep.subr.bf16.mxu0 %v879_v1  ;;  %662 = vmatprep.subr.bf16.mxu1 %v879_v1  ;;  %v624_v14 = vld [vmem:[%s1063_s2] ss:$0 sm:$0xff]  ;;  %v513_v26 = vsub.s32 0, %v512_v23  ;;  %s623_s29 = sshll.u32 %s1086_s6, 3 }
  0x56   : > { %v509_v24 = vld [vmem:[%s1066_s5] sm:$0x1]  ;;  %s324_s21 = scalar_lea.vmem %s1068_s7, %s623_s29 }
  0x57   : > { %v510_v25 = vunpack.c.l.bf16 %v509_v24  ;;  %v628_v27 = vld [vmem:[%s1065_s4] ss:$0 sm:$0xff] }
  0x58   : > { %655 = vmatpush3.bf16.msra.mxu0 %v745_v3  ;;  %663 = vmatpush3.bf16.msra.mxu1 %v747_v7  ;;  %v637_v36 = vld [vmem:[#allocation2] ss:$0 sm:$0xff] }
  0x59   : > { %664 = vmatprep.subr.bf16.mxu1 %v879_v1  ;;  %v514_v30 = vrot.slane %v510_v25, %v513_v26 }
  0x5b   : > { %657 = vmatmul.mubr.msk.bf16.vlgmr.msra.gmra.mxu0 %vm351_vm1, %v327_v6 }
  0x5c   : > { %665 = vmatpush3.bf16.msra.mxu1 %v748_v8 }
  0x5d   : > { %666 = vmatprep.subr.bf16.mxu1 %v879_v1 }
  0x60   : > { %667 = vmatpush3.bf16.msra.mxu1 %v749_v9 }
  0x61   : > { %668 = vmatprep.subr.bf16.mxu1 %v879_v1 }
  0x64   : > { %669 = vmatpush3.bf16.msra.mxu1 %v750_v10 }
  0x65   : > { %670 = vmatprep.subr.bf16.mxu1 %v879_v1 }
  0x68   : > { %671 = vmatpush3.bf16.msra.mxu1 %v751_v11 }
  0x69   : > { %672 = vmatprep.subr.bf16.mxu1 %v879_v1 }
  0x6c   : > { %673 = vmatpush3.bf16.msra.mxu1 %v752_v12 }
  0x6d   : > { %674 = vmatprep.subr.bf16.mxu1 %v879_v1 }
  0x70   : > { %675 = vmatpush3.bf16.msra.mxu1 %v753_v13 }
 0x11b   : > { %v389_v15 = vpop.f32.mrf.mxu0 }
 0x11c   : > { %v390_v16 = vadd.f32 %v624_v14, %v389_v15 }
 0x11d   : > { %v658_v17 = vpop.f32.mrf.mxu0 }
 0x11e   : > { %v395_v18 = vmax.f32 %v390_v16, 0.0 }
 0x11f   : > { %v392_v19 = vpop.f32.mrf.mxu0 }
 0x120   : > { %v396_v20 = vpack.c.bf16 %v395_v18, %v395_v18 }
 0x121   : > { %v659_v21 = vpop.f32.mrf.mxu0 }
 0x122   : > { %677 = vmatmul.mubr.bf16.vlgmr.msra.gmra.mxu1 %v396_v20 }
 0x1e2   : > { %v502_v28 = vpop.f32.mrf.mxu1 }
 0x1e3   : > { %v503_v29 = vadd.f32 %v628_v27, %v502_v28 }
 0x1e4   : > { %v678_v31 = vpop.f32.mrf.mxu1 }
 0x1e5   : > { %v508_v32 = vmax.f32 %v503_v29, 0.0 }
 0x1e6   : > { %v505_v33 = vpop.f32.mrf.mxu1 }
 0x1e7   : > { %v515_v34 = vmul.f32 %v514_v30, %v508_v32 }
 0x1e8   : > { %v679_v35 = vpop.f32.mrf.mxu1 }
 0x1e9   : > { %516 = vadd.xlane.f32.xlu0 %v515_v34 }
 0x272   : > { %v517_v37 = vpop.xlane.xlu0 %516 }
 0x273   : > { %v525_v38 = vadd.f32 %v637_v36, %v517_v37 }
 0x275   : > { %527 = vst.msk [vmem:[%s324_s21] sm:$0xff] %vm526_vm2, %v525_v38 }
 0x276 PF: > { %s1080_s23 = smov %s997_s26  ;;  %p20_p12 = scmp.ge.s32.totalorder %s986_s22, 4  }
 0x277   : > { %s1081_s26 = smov %s864_s27  ;;  %s1082_s27 = smov %s868_s28 }
 0x278   : > { %s1083_s28 = smov %s1080_s23  ;;  %s1084_s29 = smov %s986_s22 }
 0x279   :  { %22 = sbr.rel (!%p20_p12) target bundleno = 7 (0x7), region = 96 }
 0x27e   :  { %547 = vsyncpa [#allocation4], 1 }
 0x27f   :  { %549 = vsyncpa [#allocation4 + $0x1], 1 }
 0x280   :  { %550 = vsyncpa [#allocation6], 1 }

</bundles_post_ra>
